<compile_context>
chip_gen: v7x
topology: tpu7x:2x2x1
jax: 0.10.0
libtpu: 0.0.40
codegen_flags: <defaults>
</compile_context>

<pallas_src>
import functools
import math

import jax
import jax.numpy as jnp
from jax.experimental import pallas as pl
from jax.experimental.pallas import tpu as pltpu


def _round_up(v, m):
    return ((v + m - 1) // m) * m


def _lcm(a, b):
    return a * b // math.gcd(a, b)


def _sublane_quantum(dtype):
    # Minimum second-minor tile: 8 rows for 4-byte, 16 for 2-byte, 32 for 1-byte dtypes.
    return max(8, 32 // jnp.dtype(dtype).itemsize)


def _padded_vmem_bytes(rows, cols, itemsize):
    # VMEM footprint of a (rows, cols) buffer after (sublane, 128-lane) tiling/padding.
    sub = max(8, 32 // itemsize)
    return _round_up(max(rows, 1), sub) * _round_up(max(cols, 1), 128) * itemsize


def _block_diag(w, bb):
    # (r, c) -> (bb*r, bb*c) block-diagonal replication. Trace-time, tiny.
    if bb == 1:
        return w
    r, c = w.shape
    eye = jnp.eye(bb, dtype=w.dtype)
    return (eye[:, None, :, None] * w[None, :, None, :]).reshape(bb * r, bb * c)


def _forward_block(x_ref, we_ref, be_ref, wd_ref, bd_ref):
    # f32 MXU accumulation. The f32 hidden activation is fed straight into the second dot
    # (mixed-dtype dots promote the small weight operand; h is never downcast).
    h = jnp.dot(we_ref[...], x_ref[...], preferred_element_type=jnp.float32)
    h = jnp.maximum(h + be_ref[...].astype(jnp.float32), 0.0)
    y = jnp.dot(wd_ref[...], h, preferred_element_type=jnp.float32)
    return y + bd_ref[...].astype(jnp.float32)


def _snae_kernel(x_ref, we_ref, be_ref, wd_ref, bd_ref, o_ref):
    o_ref[...] = _forward_block(x_ref, we_ref, be_ref, wd_ref, bd_ref).astype(o_ref.dtype)


def _snae_mask_kernel(x_ref, we_ref, be_ref, wd_ref, bd_ref, m_ref, o_ref):
    # Mask already has one row per output row (Cm == C_out): elementwise gate.
    y = _forward_block(x_ref, we_ref, be_ref, wd_ref, bd_ref)
    o_ref[...] = (y * m_ref[...].astype(jnp.float32)).astype(o_ref.dtype)


def _snae_mask_bcast_kernel(x_ref, we_ref, be_ref, wd_ref, bd_ref, m_ref, e_ref, o_ref):
    # Cm == 1 mask: one row per batch. Broadcast to Bb*C_out output rows with a tiny MXU
    # matmul (E[j, b] = 1 iff output row j belongs to batch b).
    y = _forward_block(x_ref, we_ref, be_ref, wd_ref, bd_ref)
    m_full = jnp.dot(e_ref[...], m_ref[...].astype(jnp.float32),
                     preferred_element_type=jnp.float32)
    o_ref[...] = (y * m_full).astype(o_ref.dtype)


def snae_forward(x, params, mask=None, x_node=None, *, tile_positions=2048):
    """SnAE forward. x: [B, C_in, N, N] (PyTorch channel-first second-order tensor).

    Accepts f32/bf16 x (output matches x.dtype); mask may be float/int/bool, shaped
    [B, N, N] or [B, Cm, N, N] with Cm in {1, C_out}.
    """
    del x_node  # TODO(synk): concrete encoders may consume node features; SnAE just forwards it.
    w_e, b_e, w_d, b_d = params
    B, C_in, N, N2 = x.shape
    assert N == N2, "second-order input must be [B, C, N, N]"
    H = w_e.shape[1]
    C_out = w_d.shape[1]
    P = N * N
    x_item = jnp.dtype(x.dtype).itemsize
    w_item = jnp.dtype(w_e.dtype).itemsize

    # ---- positions: pad to a 128-lane multiple so every tile store is lane-dense ----
    P_pad = _round_up(P, 128)
    x_rows = x.reshape(B, C_in, P)
    if P_pad != P:
        x_rows = jnp.pad(x_rows, ((0, 0), (0, 0), (0, P_pad - P)))
    x_rows = x_rows.reshape(B * C_in, P_pad)   # free merge: batch folded onto sublanes

    # ---- mask prep (fused multiplicative gate on the decoder output) ----
    mask_mode = None
    mask_rows = None
    cm_rows = 0
    m_item = 0
    if mask is not None:
        mask4 = mask.reshape(B, 1, N, N) if mask.ndim == 3 else mask
        if mask4.ndim != 4:
            raise ValueError(f"mask must be [B,N,N] or [B,Cm,N,N], got {mask.shape}")
        Cm = mask4.shape[1]
        if Cm not in (1, C_out):
            raise ValueError(f"mask channel dim must be 1 or C_out={C_out}, got {Cm}")
        m_rows3 = mask4.reshape(B, Cm, P)
        if P_pad != P:
            m_rows3 = jnp.pad(m_rows3, ((0, 0), (0, 0), (0, P_pad - P)))
        m_item = jnp.dtype(mask.dtype).itemsize
        if Cm == C_out:
            mask_rows = m_rows3.reshape(B * C_out, P_pad)
            mask_mode = "full"
            cm_rows = C_out
        else:
            mask_rows = m_rows3.reshape(B, P_pad)
            mask_mode = "bcast"
            cm_rows = 1

    # ---- lane tile ----
    tp = min(P_pad, max(128, (int(tile_positions) // 128) * 128))

    # ---- batch block Bb: enough batches per grid step that every pipelined block has
    #      sublane-dense rows (multiple of the dtype's sublane quantum), then grow a bit for
    #      DMA size while staying memory bound (block-diag weights waste Bb x MXU flops,
    #      which is only free below the compute roofline). ----
    row_groups = [(C_in, x.dtype), (C_out, x.dtype)]
    if mask is not None:
        row_groups.append((cm_rows, mask.dtype))
    req = 1
    for rows, dt in row_groups:
        q = _sublane_quantum(dt)
        req = _lcm(req, q // math.gcd(rows, q))
    if B <= req:
        Bb = B          # whole-batch blocks equal the full array dims -> always tiling-legal
    else:
        Bb = req
        base_ai = 2.0 * H * (C_in + C_out) / max((C_in + C_out + cm_rows) * x_item, 1)
        bb_cap = max(req, int(200.0 / max(base_ai, 1e-9)))           # stay HBM-bound
        while (Bb * 2 <= B and Bb * 2 <= bb_cap
               and Bb * 2 * max(C_in, C_out) * tp * x_item <= (512 << 10)
               and (Bb * 2) * (Bb * 2) * (C_in + C_out) * H * w_item <= (2 << 20)):
            Bb *= 2

    gb = pl.cdiv(B, Bb)
    gp = pl.cdiv(P_pad, tp)
    # Don't collapse to a single grid step: give v7x's two TensorCores something to split.
    if gb == 1 and gp == 1 and P_pad >= 256:
        tp = _round_up(P_pad // 2, 128)
        gp = pl.cdiv(P_pad, tp)

    # ---- block-diagonal weights (trace-time, tiny) so one matmul handles Bb batches.
    #      Partial edge blocks are safe: block-diag structure keeps out-of-range garbage rows
    #      from contaminating valid rows, and Pallas masks their stores. ----
    wet = _block_diag(jnp.asarray(w_e).T, Bb)                       # (Bb*H,     Bb*C_in)
    wdt = _block_diag(jnp.asarray(w_d).T, Bb)                       # (Bb*C_out, Bb*H)
    bec = jnp.tile(jnp.asarray(b_e).reshape(H, 1), (Bb, 1))         # (Bb*H, 1)
    bdc = jnp.tile(jnp.asarray(b_d).reshape(C_out, 1), (Bb, 1))     # (Bb*C_out, 1)

    in_specs = [
        pl.BlockSpec((Bb * C_in, tp), lambda b, p: (b, p)),
        pl.BlockSpec((Bb * H, Bb * C_in), lambda b, p: (0, 0)),
        pl.BlockSpec((Bb * H, 1), lambda b, p: (0, 0)),
        pl.BlockSpec((Bb * C_out, Bb * H), lambda b, p: (0, 0)),
        pl.BlockSpec((Bb * C_out, 1), lambda b, p: (0, 0)),
    ]
    args = [x_rows, wet, bec, wdt, bdc]
    if mask_mode == "full":
        in_specs.append(pl.BlockSpec((Bb * C_out, tp), lambda b, p: (b, p)))
        args.append(mask_rows)
        kernel = _snae_mask_kernel
    elif mask_mode == "bcast":
        in_specs.append(pl.BlockSpec((Bb, tp), lambda b, p: (b, p)))
        args.append(mask_rows)
        e_bcast = jnp.repeat(jnp.eye(Bb, dtype=jnp.float32), C_out, axis=0)  # (Bb*C_out, Bb)
        in_specs.append(pl.BlockSpec((Bb * C_out, Bb), lambda b, p: (0, 0)))
        args.append(e_bcast)
        kernel = _snae_mask_bcast_kernel
    else:
        kernel = _snae_kernel
    out_spec = pl.BlockSpec((Bb * C_out, tp), lambda b, p: (b, p))

    # ---- VMEM request: actual tile-padded need (double-buffered blocks + weights + the f32
    #      intermediates h/y) with ~2x headroom. No 16 MiB floor, no clamp-to-64-MiB. ----
    buf = (_padded_vmem_bytes(Bb * C_in, tp, x_item)
           + _padded_vmem_bytes(Bb * C_out, tp, x_item)
           + _padded_vmem_bytes(Bb * H, Bb * C_in, w_item)
           + _padded_vmem_bytes(Bb * H, 1, w_item)
           + _padded_vmem_bytes(Bb * C_out, Bb * H, w_item)
           + _padded_vmem_bytes(Bb * C_out, 1, w_item))
    if mask_mode == "full":
        buf += _padded_vmem_bytes(Bb * C_out, tp, m_item)
    elif mask_mode == "bcast":
        buf += _padded_vmem_bytes(Bb, tp, m_item) + _padded_vmem_bytes(Bb * C_out, Bb, 4)
    inter = _padded_vmem_bytes(Bb * H, tp, 4) + 2 * _padded_vmem_bytes(Bb * C_out, tp, 4)
    vmem_limit = int(2 * (2 * buf + inter)) + (4 << 20)

    flops = 2 * gb * gp * tp * Bb * Bb * (C_in * H + H * C_out)   # includes block-diag waste
    bytes_accessed = (x_rows.size * x_item
                      + (0 if mask_rows is None else mask_rows.size * m_item)
                      + (wet.size + bec.size + wdt.size + bdc.size) * w_item
                      + B * C_out * P_pad * x_item)

    out_rows = pl.pallas_call(
        kernel,
        out_shape=jax.ShapeDtypeStruct((B * C_out, P_pad), x.dtype),
        grid_spec=pltpu.PrefetchScalarGridSpec(
            num_scalar_prefetch=0,
            grid=(gb, gp),
            in_specs=in_specs,
            out_specs=out_spec,
        ),
        compiler_params=pltpu.CompilerParams(
            dimension_semantics=("parallel", "parallel"),
            vmem_limit_bytes=vmem_limit,
        ),
        cost_estimate=pl.CostEstimate(
            flops=flops, transcendentals=0, bytes_accessed=bytes_accessed),
    )(*args)

    # Free reshape back to PyTorch channel-first layout [B, C_out, N, N].
    out = out_rows.reshape(B, C_out, P_pad)
    if P_pad != P:
        out = out[:, :, :P]
    return out.reshape(B, C_out, N, N)


def init_params(c_in, hidden, c_out, key):
    k1, k2, k3, k4 = jax.random.split(key, 4)
    w_e = jax.random.normal(k1, (c_in, hidden), jnp.float32) / jnp.sqrt(c_in)
    b_e = 0.1 * jax.random.normal(k3, (1, hidden), jnp.float32)
    w_d = jax.random.normal(k2, (hidden, c_out), jnp.float32) / jnp.sqrt(hidden)
    b_d = 0.1 * jax.random.normal(k4, (1, c_out), jnp.float32)
    return w_e, b_e, w_d, b_d


def _reference(x, params, mask=None):
    w_e, b_e, w_d, b_d = params
    xr = jnp.transpose(x, (0, 2, 3, 1)).astype(jnp.float32)
    h = jnp.maximum(xr @ w_e.astype(jnp.float32) + b_e.reshape(-1).astype(jnp.float32), 0.0)
    y = h @ w_d.astype(jnp.float32) + b_d.reshape(-1).astype(jnp.float32)
    y = jnp.transpose(y, (0, 3, 1, 2))
    if mask is not None:
        m = mask if mask.ndim == 4 else mask[:, None]
        y = y * m.astype(jnp.float32)
    return y


if __name__ == "__main__":
    key = jax.random.PRNGKey(0)
    kx, kp, km1, km2 = jax.random.split(key, 4)

    B, C_in, N = 2, 4, 16            # second-order input: [B, C, N, N]
    hidden, C_out = 32, 4

    x = jax.random.normal(kx, (B, C_in, N, N), jnp.float32)
    params = init_params(C_in, hidden, C_out, kp)
    mask_b = (jax.random.uniform(km1, (B, 1, N, N)) > 0.3).astype(jnp.float32)       # Cm == 1
    mask_c = (jax.random.uniform(km2, (B, C_out, N, N)) > 0.3).astype(jnp.float32)   # Cm == C_out

    fwd = jax.jit(functools.partial(snae_forward, tile_positions=2048))

    # No mask.
    out = jax.block_until_ready(fwd(x, params))
    ref = _reference(x, params)
    assert out.shape == (B, C_out, N, N)
    assert jnp.allclose(out, ref, atol=1e-5, rtol=1e-5)

    # Fused per-batch (Cm == 1) mask gate, broadcast in-kernel via the tiny MXU matmul.
    out_b = jax.block_until_ready(fwd(x, params, mask_b))
    assert jnp.allclose(out_b, _reference(x, params, mask_b), atol=1e-5, rtol=1e-5)

    # Fused per-output-channel (Cm == C_out) mask gate.
    out_c = jax.block_until_ready(fwd(x, params, mask_c))
    assert jnp.allclose(out_c, _reference(x, params, mask_c), atol=1e-5, rtol=1e-5)

    # bf16 I/O path (halves HBM bytes on bandwidth-starved v5e); f32 MXU accumulation.
    xb = x.astype(jnp.bfloat16)
    out_bf = jax.block_until_ready(fwd(xb, params, mask_b))
    ref_bf = _reference(xb.astype(jnp.float32), params, mask_b)
    assert out_bf.dtype == jnp.bfloat16
    assert jnp.allclose(out_bf.astype(jnp.float32), ref_bf, atol=5e-2, rtol=5e-2)

    print("KERNEL_OK")
</pallas_src>

<mosaic_0001>
module attributes {stable_mosaic.version = 11 : i64} {
  func.func @_snae_kernel(%arg0: i32, %arg1: i32, %arg2: memref<8x128xf32, #tpu.memory_space<vmem>>, %arg3: memref<64x8xf32, #tpu.memory_space<vmem>>, %arg4: memref<64x1xf32, #tpu.memory_space<vmem>>, %arg5: memref<8x64xf32, #tpu.memory_space<vmem>>, %arg6: memref<8x1xf32, #tpu.memory_space<vmem>>, %arg7: memref<8x128xf32, #tpu.memory_space<vmem>>) attributes {dimension_semantics = [#tpu.dimension_semantics<parallel>, #tpu.dimension_semantics<parallel>], iteration_bounds = array<i64: 1, 2>, scalar_prefetch = 0 : i64, scratch_operands = 0 : i64, tpu.core_type = #tpu.core_type<tc>, window_params = [{transform_indices = @transform_0, window_bounds = array<i64: 8, 128>}, {pipeline_mode = #tpu.pipeline_mode<synchronous>, transform_indices = @transform_1, window_bounds = array<i64: 64, 8>}, {pipeline_mode = #tpu.pipeline_mode<synchronous>, transform_indices = @transform_2, window_bounds = array<i64: 64, 1>}, {pipeline_mode = #tpu.pipeline_mode<synchronous>, transform_indices = @transform_3, window_bounds = array<i64: 8, 64>}, {pipeline_mode = #tpu.pipeline_mode<synchronous>, transform_indices = @transform_4, window_bounds = array<i64: 8, 1>}, {transform_indices = @transform_5, window_bounds = array<i64: 8, 128>}]} {
    %c0 = arith.constant 0 : index
    %c0_0 = arith.constant 0 : index
    %0 = vector.load %arg3[%c0, %c0_0] : memref<64x8xf32, #tpu.memory_space<vmem>>, vector<64x8xf32>
    %c0_1 = arith.constant 0 : index
    %c0_2 = arith.constant 0 : index
    %1 = vector.load %arg2[%c0_1, %c0_2] : memref<8x128xf32, #tpu.memory_space<vmem>>, vector<8x128xf32>
    %cst = arith.constant dense<0.000000e+00> : vector<64x128xf32>
    %2 = tpu.matmul %0, %1, %cst {dimension_numbers = #tpu.dot_dimension_numbers<[1], [0], [0], [1], [0, 0, 1, 1], [], []>} : vector<64x8xf32>, vector<8x128xf32>, vector<64x128xf32> -> vector<64x128xf32>
    %c0_3 = arith.constant 0 : index
    %c0_4 = arith.constant 0 : index
    %3 = vector.load %arg4[%c0_3, %c0_4] : memref<64x1xf32, #tpu.memory_space<vmem>>, vector<64x1xf32>
    %4 = vector.broadcast %3 : vector<64x1xf32> to vector<64x128xf32>
    %5 = arith.addf %2, %4 : vector<64x128xf32>
    %cst_5 = arith.constant 0.000000e+00 : f32
    %6 = vector.broadcast %cst_5 : f32 to vector<64x128xf32>
    %7 = arith.maximumf %5, %6 : vector<64x128xf32>
    %c0_6 = arith.constant 0 : index
    %c0_7 = arith.constant 0 : index
    %8 = vector.load %arg5[%c0_6, %c0_7] : memref<8x64xf32, #tpu.memory_space<vmem>>, vector<8x64xf32>
    %cst_8 = arith.constant dense<0.000000e+00> : vector<8x128xf32>
    %9 = tpu.matmul %8, %7, %cst_8 {dimension_numbers = #tpu.dot_dimension_numbers<[1], [0], [0], [1], [0, 0, 1, 1], [], []>} : vector<8x64xf32>, vector<64x128xf32>, vector<8x128xf32> -> vector<8x128xf32>
    %c0_9 = arith.constant 0 : index
    %c0_10 = arith.constant 0 : index
    %10 = vector.load %arg6[%c0_9, %c0_10] : memref<8x1xf32, #tpu.memory_space<vmem>>, vector<8x1xf32>
    %11 = vector.broadcast %10 : vector<8x1xf32> to vector<8x128xf32>
    %12 = arith.addf %9, %11 : vector<8x128xf32>
    %c0_11 = arith.constant 0 : index
    %c0_12 = arith.constant 0 : index
    %13 = vector.load %arg7[%c0_11, %c0_12] : memref<8x128xf32, #tpu.memory_space<vmem>>, vector<8x128xf32>
    tpu.vector_store %arg7[%c0_11, %c0_12], %12 {strides = array<i32>} : memref<8x128xf32, #tpu.memory_space<vmem>>, vector<8x128xf32>,
    return
  }
  func.func @transform_0(%arg0: i32, %arg1: i32) -> (i32, i32) {
    %c0_i32 = arith.constant 0 : i32
    return %arg0, %arg1 : i32, i32
  }
  func.func @transform_1(%arg0: i32, %arg1: i32) -> (i32, i32) {
    %c0_i32 = arith.constant 0 : i32
    %c0_i32_0 = arith.constant 0 : i32
    %c0_i32_1 = arith.constant 0 : i32
    return %c0_i32, %c0_i32_0 : i32, i32
  }
  func.func @transform_2(%arg0: i32, %arg1: i32) -> (i32, i32) {
    %c0_i32 = arith.constant 0 : i32
    %c0_i32_0 = arith.constant 0 : i32
    %c0_i32_1 = arith.constant 0 : i32
    return %c0_i32, %c0_i32_0 : i32, i32
  }
  func.func @transform_3(%arg0: i32, %arg1: i32) -> (i32, i32) {
    %c0_i32 = arith.constant 0 : i32
    %c0_i32_0 = arith.constant 0 : i32
    %c0_i32_1 = arith.constant 0 : i32
    return %c0_i32, %c0_i32_0 : i32, i32
  }
  func.func @transform_4(%arg0: i32, %arg1: i32) -> (i32, i32) {
    %c0_i32 = arith.constant 0 : i32
    %c0_i32_0 = arith.constant 0 : i32
    %c0_i32_1 = arith.constant 0 : i32
    return %c0_i32, %c0_i32_0 : i32, i32
  }
  func.func @transform_5(%arg0: i32, %arg1: i32) -> (i32, i32) {
    %c0_i32 = arith.constant 0 : i32
    return %arg0, %arg1 : i32, i32
  }
}

</mosaic_0001>

<bundles_post_ra>
// kernel: snae_forward.1
= control target key start
LH: loop header
LB: loop body
LE: loop exit
PB: predicated region body
PF: predicated region fallthrough
CT: control target
= control target key end

     0   :  { %s785_s18 = smov 0   ;;  %s787_s19 = smov 0   ;;  %s887_s0 = inlined_call_operand.vmem [shape: f32[8,256], index: 0, kind: input, shape index: {}]   ;;  %s888_s1 = inlined_call_operand.vmem [shape: f32[64,8], index: 1, kind: input, shape index: {}]   ;;  %s889_s2 = inlined_call_operand.vmem [shape: f32[64,1], index: 2, kind: input, shape index: {}]   ;;  %s890_s3 = inlined_call_operand.vmem [shape: f32[8,64], index: 3, kind: input, shape index: {}]   ;;  %s891_s4 = inlined_call_operand.vmem [shape: f32[8,1], index: 4, kind: input, shape index: {}]   ;;  %s892_s5 = inlined_call_operand.vmem [shape: f32[8,256], index: 5, kind: output, shape index: {}]  }
   0x1   :  { %s789_s20 = smov 0  }
   0x2 LB: > { %s24_s21 = sadd.s32 1, %s745_s19  ;;  %p620_p0 = scmp.ge.s32.totalorder %s749_s20, 1  ;;  %s749_s20 = sphi %s789_s20, %s15_s20   ;;  %s745_s19 = sphi %s787_s19, %s894_s19   ;;  %s741_s18 = sphi %s785_s18, %s893_s18  }
   0x3   : > { %p25_p1 = scmp.ge.s32.totalorder %s24_s21, 2  ;;  %p206_p2 = scmp.lt.s32.totalorder %s749_s20, 3 }
   0x5   : > { %s896_s21 = smov (%p25_p1, %s24_s21), 0  ;;  %p207_p3 = pnand %p620_p0, %p206_p2 }
   0x6   : > { %p242_p4 = scmp.lt.s32.totalorder (!%p207_p3), %s741_s18, 1  ;;  %v256_v0 = vld [vmem:[%s888_s1] sm:$0xff] (!%p207_p3)  ;;  %vm313_vm0 = vcmask (!%p207_p3), 64512   ;;  %v751_v1 = vmov (!%p207_p3), 0   ;;  %v267_v3 = vld [vmem:[%s889_s2 + $0x10] sm:$0xff] (!%p207_p3)  ;;  %v266_v4 = vld [vmem:[%s889_s2 + $0x8] sm:$0xff] (!%p207_p3) }
   0x7   : > { %210 = sbr.rel (%p207_p3) target bundleno = 469 (0x1d5), region = 40  ;;  %654 = vmatprep.mubr.msk.f32.mxu0 (!%p207_p3), %vm313_vm0, %v256_v0  ;;  %725 = vset.pattern.permute.xlu0 (!%p207_p3), %v751_v1  ;;  %v265_v2 = vld [vmem:[%s889_s2] sm:$0xff] (!%p207_p3)  ;;  %v268_v5 = vld [vmem:[%s889_s2 + $0x18] sm:$0xff] (!%p207_p3)  ;;  %v257_v7 = vld [vmem:[%s888_s1 + $0x8] sm:$0xff] (!%p207_p3)  ;;  %v752_v19 = vmov (!%p207_p3), 0.0|0.0   ;;  %vm753_vm1 = vmmov (!%p207_p3), 0  }
   0x8   : > { %726 = vset.pattern.permute.xlu1 (!%p207_p3), %v751_v1  ;;  %275 = vperm.xlu0 (!%p207_p3), %725, %v265_v2   ;;  %v258_v8 = vld [vmem:[%s888_s1 + $0x10] sm:$0xff] (!%p207_p3)  ;;  %v269_v9 = vld [vmem:[%s889_s2 + $0x20] sm:$0xff] (!%p207_p3)  ;;  %v270_v10 = vld [vmem:[%s889_s2 + $0x28] sm:$0xff] (!%p207_p3)  ;;  %v754_v20 = vmov (!%p207_p3), 0.0   ;;  %vm458_vm2 = vcmask (!%p207_p3), 523264  }
   0x9   : > { %285 = vperm.xlu1 (!%p207_p3), %726, %v267_v3   ;;  %v259_v11 = vld [vmem:[%s888_s1 + $0x18] sm:$0xff] (!%p207_p3)  ;;  %v260_v12 = vld [vmem:[%s888_s1 + $0x20] sm:$0xff] (!%p207_p3)  ;;  %v271_v13 = vld [vmem:[%s889_s2 + $0x30] sm:$0xff] (!%p207_p3)  ;;  %685 = vmatprep.subr.bf16.mxu1 (!%p207_p3), %v752_v19 }
   0xa   : > { %v272_v14 = vld [vmem:[%s889_s2 + $0x38] sm:$0xff] (!%p207_p3)  ;;  %v261_v15 = vld [vmem:[%s888_s1 + $0x28] sm:$0xff] (!%p207_p3)  ;;  %v262_v16 = vld [vmem:[%s888_s1 + $0x30] sm:$0xff] (!%p207_p3)  ;;  %682 = vmatprep.mubr.msk.f32.mxu1 (!%p207_p3), %vm753_vm1, %v754_v20 }
   0xb   : > { %v452_v17 = vld [vmem:[%s891_s4] sm:$0xff] (!%p207_p3)  ;;  %v263_v18 = vld [vmem:[%s888_s1 + $0x38] sm:$0xff] (!%p207_p3) }
   0xc   : > { %280 = vperm.xlu0 (!%p207_p3), %725, %v266_v4   ;;  %v451_v57 = vld [vmem:[%s890_s3] sm:$0xff] (!%p207_p3) }
   0xd   : > { %290 = vperm.xlu1 (!%p207_p3), %726, %v268_v5  }
   0xe   : > { %s898_s18 = smov (!%p242_p4, %s741_s18), 1 }
   0xf   : > { %s621_s28 = sshll.u32 %s898_s18, 3 }
  0x10   : > { %s247_s8 = scalar_lea.vmem %s887_s0, %s621_s28  ;;  %295 = vperm.xlu0 %725, %v269_v9   ;;  %s255_s23 = scalar_lea.vmem %s892_s5, %s621_s28 }
  0x11   : > { %v264_v6 = vld [vmem:[%s247_s8] sm:$0xff]  ;;  %300 = vperm.xlu1 %726, %v270_v10  }
  0x12   : > { %652 = vmatprep.subr.mxu0 %v264_v6 }
  0x13   : > { %653 = vmatpush3.msra.mxu0 %v264_v6 }
  0x14   : > { %655 = vmatmul.mubr.msk.f32.vlgmr.msra.gmra.mrb[0].mxu0 %vm313_vm0, %v257_v7  ;;  %305 = vperm.xlu0 %725, %v271_v13  }
  0x15   : > { %657 = vmatprep.mubr.msk.f32.mxu0 %vm313_vm0, %v258_v8  ;;  %310 = vperm.xlu1 %726, %v272_v14  }
  0x18   : > { %658 = vmatmul.mubr.msk.f32.gmra.mrb[2].mxu0 %vm313_vm0, %v259_v11  ;;  %455 = vperm.xlu0 %725, %v452_v17  }
  0x19   : > { %660 = vmatprep.mubr.msk.f32.mxu0 %vm313_vm0, %v260_v12 }
  0x1c   : > { %661 = vmatmul.mubr.msk.f32.gmra.mrb[4].mxu0 %vm313_vm0, %v261_v15 }
  0x1d   : > { %663 = vmatprep.mubr.msk.f32.mxu0 %vm313_vm0, %v262_v16 }
  0x20   : > { %664 = vmatmul.mubr.msk.f32.gmra.mrb[6].mxu0 %vm313_vm0, %v263_v18 }
  0x87   : > { %v276_v21 = vpop.permute.xlu0 %275 }
  0x88   : > { %v286_v22 = vpop.permute.xlu1 %285 }
  0x8b   : > { %v281_v23 = vpop.permute.xlu0 %280 }
  0x8c   : > { %v291_v24 = vpop.permute.xlu1 %290 }
  0x8f   : > { %v296_v37 = vpop.permute.xlu0 %295 }
  0x90   : > { %v301_v34 = vpop.permute.xlu1 %300 }
  0x93   : > { %v306_v49 = vpop.permute.xlu0 %305 }
  0x94   : > { %v311_v46 = vpop.permute.xlu1 %310 }
  0x97   : > { %v456_v58 = vpop.permute.xlu0 %455 }
  0xe7   : > { %v656_v25 = vpop.f32.mrb[0].mxu0 }
  0xe8   : > { %v410_v26 = vadd.f32 %v656_v25, %v281_v23  ;;  %v404_v27 = vpop.f32.mrb[1].mxu0 }
  0xe9   : > { %v405_v28 = vadd.f32 %v404_v27, %v276_v21 }
  0xea   : > { %v444_v29 = vmax.f32 %v410_v26, 0.0 }
  0xeb   : > { %v443_v30 = vmax.f32 %v405_v28, 0.0  ;;  %v659_v31 = vpop.f32.mrb[2].mxu0 }
  0xec   : > { %v420_v32 = vadd.f32 %v659_v31, %v291_v24  ;;  %v414_v33 = vpop.f32.mrb[3].mxu0 }
  0xed   : > { %v415_v35 = vadd.f32 %v414_v33, %v286_v22  ;;  %v686_v36 = vpack.c.bf16 %v444_v29, %v443_v30 }
  0xee   : > { %v446_v38 = vmax.f32 %v420_v32, 0.0 }
  0xef   : > { %v445_v39 = vmax.f32 %v415_v35, 0.0  ;;  %v662_v40 = vpop.f32.mrb[4].mxu0  ;;  %687 = vmatpush3.bf16.msra.mxu1 %v686_v36 }
  0xf0   : > { %v430_v41 = vadd.f32 %v662_v40, %v301_v34  ;;  %v424_v42 = vpop.f32.mrb[5].mxu0  ;;  %688 = vmatprep.subr.bf16.mxu1 %v752_v19 }
  0xf1   : > { %v689_v43 = vpack.c.bf16 %v446_v38, %v445_v39  ;;  %v425_v44 = vadd.f32 %v424_v42, %v296_v37 }
  0xf2   : > { %v448_v45 = vmax.f32 %v430_v41, 0.0 }
  0xf3   : > { %v447_v47 = vmax.f32 %v425_v44, 0.0  ;;  %v665_v48 = vpop.f32.mrb[6].mxu0  ;;  %690 = vmatpush3.bf16.msra.mxu1 %v689_v43 }
  0xf4   : > { %v440_v50 = vadd.f32 %v665_v48, %v311_v46  ;;  %v434_v51 = vpop.f32.mrb[7].mxu0  ;;  %691 = vmatprep.subr.bf16.mxu1 %v752_v19 }
  0xf5   : > { %v692_v52 = vpack.c.bf16 %v448_v45, %v447_v47  ;;  %v435_v53 = vadd.f32 %v434_v51, %v306_v49 }
  0xf6   : > { %v450_v54 = vmax.f32 %v440_v50, 0.0 }
  0xf7   : > { %v449_v55 = vmax.f32 %v435_v53, 0.0  ;;  %693 = vmatpush3.bf16.msra.mxu1 %v692_v52 }
  0xf8   : > { %694 = vmatprep.subr.bf16.mxu1 %v752_v19 }
  0xf9   : > { %v695_v56 = vpack.c.bf16 %v450_v54, %v449_v55 }
  0xfb   : > { %696 = vmatpush3.bf16.msra.mxu1 %v695_v56 }
  0xfe   : > { %683 = vmatmul.mubr.msk.f32.vlgmr.msra.gmra.mrb[0].mxu1 %vm458_vm2, %v451_v57 }
 0x1d1   : > { %v528_v59 = vpop.f32.mrb[0].mxu1 }
 0x1d2   : > { %v529_v60 = vadd.f32 %v528_v59, %v456_v58  ;;  %v684_v61 = vpop.f32.mrb[1].mxu1 }
 0x1d4   : > { %532 = vst [vmem:[%s255_s23] sm:$0xff] %v529_v60 }
 0x1d5 PF: > { %s15_s20 = sadd.s32 1, %s749_s20   ;;  %s893_s18 = smov %s745_s19 }
 0x1d6   : > { %p12_p5 = scmp.ge.s32.totalorder %s15_s20, 4   ;;  %s894_s19 = smov %s896_s21 }
 0x1d8   :  { %14 = sbr.rel (!%p12_p5) target bundleno = 2 (0x2), region = 70 }

</bundles_post_ra>
